<compile_context>
chip_gen: v7x
topology: tpu7x:2x2x1
jax: 0.10.0
libtpu: 0.0.40
codegen_flags: <defaults>
</compile_context>

<pallas_src>
import functools

import jax
import jax.numpy as jnp
import numpy as np
from jax.experimental import pallas as pl
from jax.experimental.pallas import tpu as pltpu

LANE = 128


def _round_up(n, m):
    return ((n + m - 1) // m) * m


# ----------------------------- Pallas kernel --------------------------------
def keynet_kernel(x_ref, we_ref, be_ref, wlq_ref, blq_ref, wg_ref, bg_ref,
                  local_ref, glob_ref, *, n_classes):
    """One grid step = BB batch elements (BB*T feature rows)."""
    BB, T, Fp = x_ref.shape
    rows = BB * T

    # x arrives as f32; cast to bf16 on the VPU (saves a wrapper-side cast pass).
    x2 = x_ref[...].reshape(rows, Fp).astype(jnp.bfloat16)

    # TODO(synk): BaseTransformer's definition is not provided in the source;
    # a deterministic single dense + tanh stand-in encoder is used here.
    # Only the bf16 copy of the encoder output stays live across the body.
    e = jnp.tanh(
        jnp.dot(x2, we_ref[...], preferred_element_type=jnp.float32)
        + be_ref[...]).astype(jnp.bfloat16)               # (rows, Fp) bf16

    # Fused [local_head | attn_query] matmul: lanes 0..C-1 = local logits,
    # lane C = attention score (bias-free), remaining lanes zero padding.
    lq = (jnp.dot(e, wlq_ref[...], preferred_element_type=jnp.float32)
          + blq_ref[...])                                 # (rows, CP) f32
    lq3 = lq.reshape(BB, T, -1)                           # (BB, T, CP)
    local_ref[...] = lq3.astype(local_ref.dtype)          # bf16, lane-dense vst

    # --- global head: per-batch softmax over T on the score column (lane C) ---
    scores = lq3[:, :, n_classes:n_classes + 1]           # (BB, T, 1) f32
    m = jnp.max(scores, axis=1, keepdims=True)
    p = jnp.exp(scores - m)
    w = p * pl.reciprocal(jnp.sum(p, axis=1, keepdims=True), approx=True)

    # Attention pooling as a bf16 sublane reduce over T (VPU/XLU, not MXU).
    e3 = e.reshape(BB, T, Fp)
    gf = jnp.sum(e3 * w.astype(jnp.bfloat16), axis=1)     # (BB, Fp) bf16

    glob = (jnp.dot(gf, wg_ref[...], preferred_element_type=jnp.float32)
            + bg_ref[...])                                # (BB, CG) f32
    glob_ref[...] = glob[None].astype(glob_ref.dtype)     # (1, BB, CG) dense store


# --------------------------- one-time weight prep -----------------------------
def prepare_keynet_params(params):
    """Pad weights to lane-aligned shapes and cast to bf16 ONCE (hoisted out of
    the per-call forward so these pad/convert passes don't run every step)."""
    F = params["we"].shape[0]
    C = params["wl"].shape[1]
    Fp = _round_up(F, LANE)                  # lane-aligned feature dim
    CP = _round_up(C + 1, LANE)              # [local logits | score] lanes
    CG = _round_up(C, LANE)                  # global logits lanes

    def pad2(a, r, c):
        return jnp.pad(a, ((0, r - a.shape[0]), (0, c - a.shape[1])))

    # Fused weight: local-head columns first (lanes 0..C-1), attn query at lane C.
    wlq = jnp.concatenate([params["wl"], params["q"][:, None]], axis=1)
    blq = jnp.concatenate([params["bl"], jnp.zeros((1, 1), jnp.float32)], axis=1)

    prep = dict(
        we=pad2(params["we"], Fp, Fp).astype(jnp.bfloat16),
        be=pad2(params["be"], 1, Fp).astype(jnp.float32),
        wlq=pad2(wlq, Fp, CP).astype(jnp.bfloat16),
        blq=pad2(blq, 1, CP).astype(jnp.float32),
        wg=pad2(params["wg"], Fp, CG).astype(jnp.bfloat16),
        bg=pad2(params["bg"], 1, CG).astype(jnp.float32),
    )
    meta = dict(n_freq=F, n_classes=C, Fp=Fp, CP=CP, CG=CG)
    return prep, meta


# ------------------------------ wrapper --------------------------------------
def keynet_forward(x, prep, meta, mode="both"):
    """x: [B, C, T, F] float32. Returns local logits [B,T,n_classes] and/or
    global logits [B,n_classes] depending on `mode` (matches KeyNet.forward)."""
    if x.ndim == 3:
        x = x[:, None]                       # unsqueeze channel dim, like PyTorch
    B, CH, T, F = x.shape
    # TODO(synk): channel collapse for CH>1 is a mean stand-in (BaseTransformer's
    # multi-channel handling is not specified in the provided source).
    x_btf = x[:, 0] if CH == 1 else jnp.mean(x, axis=1)

    C, Fp, CP, CG = meta["n_classes"], meta["Fp"], meta["CP"], meta["CG"]

    # Batch tiling: ~2048 MXU rows per grid step (amortizes per-step overhead),
    # but keep >= 2 grid steps whenever B allows so the "parallel" axis can
    # shard across both TensorCores on v7x (free on v5e/v6e).
    BB = min(B, max(1, 2048 // T))
    if B >= 2:
        BB = min(BB, pl.cdiv(B, 2))
    G = pl.cdiv(B, BB)
    BB = pl.cdiv(B, G)                       # rebalance so padding is minimal
    Bp = G * BB

    # x stays f32 (kernel casts to bf16 in-VPU); pad only when actually needed.
    xk = x_btf
    if Bp != B or Fp != F:
        xk = jnp.pad(xk, ((0, Bp - B), (0, 0), (0, Fp - F)))

    cost = pl.CostEstimate(
        flops=2 * Bp * T * Fp * (Fp + CP) + 2 * Bp * Fp * CG + 4 * Bp * T * Fp,
        transcendentals=Bp * T * Fp + Bp * T + Bp,
        bytes_accessed=(Bp * T * Fp * 4                          # x (f32)
                        + (Fp * Fp + Fp * CP + Fp * CG) * 2      # weights (bf16)
                        + (Fp + CP + CG) * 4                     # biases (f32)
                        + Bp * T * CP * 2 + Bp * CG * 4),        # outputs
    )

    kernel = functools.partial(keynet_kernel, n_classes=C)

    # NOTE: weight BlockSpecs use constant index_maps (fetched once, never
    # re-fetched across grid steps).  For a scaled-up encoder on v7x (64 MiB
    # VMEM) single-buffer them / K-tile the encoder matmul; at F=256 their
    # footprint is negligible.
    local_p, glob_p = pl.pallas_call(
        kernel,
        grid=(G,),
        in_specs=[
            pl.BlockSpec((BB, T, Fp), lambda g: (g, 0, 0)),   # x tile (f32)
            pl.BlockSpec((Fp, Fp), lambda g: (0, 0)),         # encoder W
            pl.BlockSpec((1, Fp), lambda g: (0, 0)),          # encoder b
            pl.BlockSpec((Fp, CP), lambda g: (0, 0)),         # fused [local W | q]
            pl.BlockSpec((1, CP), lambda g: (0, 0)),          # fused [local b | 0]
            pl.BlockSpec((Fp, CG), lambda g: (0, 0)),         # global W
            pl.BlockSpec((1, CG), lambda g: (0, 0)),          # global b
        ],
        out_specs=[
            pl.BlockSpec((BB, T, CP), lambda g: (g, 0, 0)),   # local, bf16, lane-dense
            pl.BlockSpec((1, BB, CG), lambda g: (g, 0, 0)),   # global, sublane-dense
        ],
        out_shape=(
            jax.ShapeDtypeStruct((Bp, T, CP), jnp.bfloat16),
            jax.ShapeDtypeStruct((G, BB, CG), jnp.float32),
        ),
        compiler_params=pltpu.CompilerParams(
            dimension_semantics=("parallel",),
            vmem_limit_bytes=32 * 1024 * 1024),
        cost_estimate=cost,
    )(xk, prep["we"], prep["be"], prep["wlq"], prep["blq"],
      prep["wg"], prep["bg"])

    local = local_p[:B, :, :C].astype(jnp.float32)   # contiguous-start slice
    glob = glob_p.reshape(Bp, CG)[:B, :C]
    if mode == "local":
        return local
    if mode == "global":
        return glob
    return local, glob


# ------------------------- deterministic params ------------------------------
def init_params(key, n_freq, n_classes):
    ks = jax.random.split(key, 7)
    scale = 0.02
    # Torch Linear stores weight as (out, in); we pre-transpose to (in, out).
    we = jax.random.normal(ks[0], (n_freq, n_freq), jnp.float32) * scale  # encoder stand-in
    be = jax.random.normal(ks[1], (1, n_freq), jnp.float32) * scale
    wl = jax.random.normal(ks[2], (n_freq, n_classes), jnp.float32) * scale
    bl = jax.random.normal(ks[3], (1, n_classes), jnp.float32) * scale
    q = jax.random.normal(ks[4], (n_freq,), jnp.float32)                  # attn_query ~ randn
    wg = jax.random.normal(ks[5], (n_freq, n_classes), jnp.float32) * scale
    bg = jax.random.normal(ks[6], (1, n_classes), jnp.float32) * scale
    return dict(we=we, be=be, wl=wl, bl=bl, q=q, wg=wg, bg=bg)


# --------------------------- pure-JAX reference -------------------------------
def ref_forward(x, params):
    if x.ndim == 3:
        x = x[:, None]
    x_btf = x[:, 0] if x.shape[1] == 1 else jnp.mean(x, axis=1)
    e = jnp.tanh(x_btf @ params["we"] + params["be"])
    local = e @ params["wl"] + params["bl"]
    scores = jnp.einsum("btf,f->bt", e, params["q"])
    w = jax.nn.softmax(scores, axis=1)
    gf = jnp.sum(e * w[..., None], axis=1)
    glob = gf @ params["wg"] + params["bg"]
    return local, glob


if __name__ == "__main__":
    B, CH, T, F, n_classes = 2, 1, 8, 256, 24
    key = jax.random.PRNGKey(0)
    k_x, k_p = jax.random.split(key)
    x = jax.random.normal(k_x, (B, CH, T, F), jnp.float32)
    params = init_params(k_p, F, n_classes)
    prep, meta = prepare_keynet_params(params)          # one-time weight prep

    local, glob = keynet_forward(x, prep, meta, mode="both")
    jax.block_until_ready((local, glob))

    ref_local, ref_glob = ref_forward(x, params)
    # Kernel uses bf16 MXU inputs, bf16 pooling/outputs, and an approximate
    # reciprocal softmax vs an f32 reference, hence relaxed tolerances.
    np.testing.assert_allclose(np.asarray(local), np.asarray(ref_local),
                               rtol=5e-2, atol=2e-2)
    np.testing.assert_allclose(np.asarray(glob), np.asarray(ref_glob),
                               rtol=5e-2, atol=2e-2)

    print("KERNEL_OK")
</pallas_src>

<mosaic_0001>
module attributes {stable_mosaic.version = 11 : i64} {
  func.func @keynet_kernel(%arg0: i32, %arg1: memref<1x8x256xf32, #tpu.memory_space<vmem>>, %arg2: memref<256x256xbf16, #tpu.memory_space<vmem>>, %arg3: memref<1x256xf32, #tpu.memory_space<vmem>>, %arg4: memref<256x128xbf16, #tpu.memory_space<vmem>>, %arg5: memref<1x128xf32, #tpu.memory_space<vmem>>, %arg6: memref<256x128xbf16, #tpu.memory_space<vmem>>, %arg7: memref<1x128xf32, #tpu.memory_space<vmem>>, %arg8: memref<1x8x128xbf16, #tpu.memory_space<vmem>>, %arg9: memref<1x1x128xf32, #tpu.memory_space<vmem>>) attributes {dimension_semantics = [#tpu.dimension_semantics<parallel>], iteration_bounds = array<i64: 2>, scalar_prefetch = 0 : i64, scratch_operands = 0 : i64, tpu.core_type = #tpu.core_type<tc>, window_params = [{transform_indices = @transform_0, window_bounds = array<i64: 1, 8, 256>}, {pipeline_mode = #tpu.pipeline_mode<synchronous>, transform_indices = @transform_1, window_bounds = array<i64: 256, 256>}, {pipeline_mode = #tpu.pipeline_mode<synchronous>, transform_indices = @transform_2, window_bounds = array<i64: 1, 256>}, {pipeline_mode = #tpu.pipeline_mode<synchronous>, transform_indices = @transform_3, window_bounds = array<i64: 256, 128>}, {pipeline_mode = #tpu.pipeline_mode<synchronous>, transform_indices = @transform_4, window_bounds = array<i64: 1, 128>}, {pipeline_mode = #tpu.pipeline_mode<synchronous>, transform_indices = @transform_5, window_bounds = array<i64: 256, 128>}, {pipeline_mode = #tpu.pipeline_mode<synchronous>, transform_indices = @transform_6, window_bounds = array<i64: 1, 128>}, {transform_indices = @transform_7, window_bounds = array<i64: 1, 8, 128>}, {transform_indices = @transform_8, window_bounds = array<i64: 1, 1, 128>}]} {
    %c0 = arith.constant 0 : index
    %c0_0 = arith.constant 0 : index
    %c0_1 = arith.constant 0 : index
    %0 = vector.load %arg1[%c0, %c0_0, %c0_1] : memref<1x8x256xf32, #tpu.memory_space<vmem>>, vector<1x8x256xf32>
    %1 = vector.shape_cast %0 : vector<1x8x256xf32> to vector<8x256xf32>
    %2 = arith.truncf %1 : vector<8x256xf32> to vector<8x256xbf16>
    %c0_2 = arith.constant 0 : index
    %c0_3 = arith.constant 0 : index
    %3 = vector.load %arg2[%c0_2, %c0_3] : memref<256x256xbf16, #tpu.memory_space<vmem>>, vector<256x256xbf16>
    %cst = arith.constant dense<0.000000e+00> : vector<8x256xf32>
    %4 = tpu.matmul %2, %3, %cst {dimension_numbers = #tpu.dot_dimension_numbers<[1], [0], [0], [1], [0, 0, 1, 1], [], []>} : vector<8x256xbf16>, vector<256x256xbf16>, vector<8x256xf32> -> vector<8x256xf32>
    %c0_4 = arith.constant 0 : index
    %c0_5 = arith.constant 0 : index
    %5 = vector.load %arg3[%c0_4, %c0_5] : memref<1x256xf32, #tpu.memory_space<vmem>>, vector<1x256xf32>
    %6 = vector.broadcast %5 : vector<1x256xf32> to vector<8x256xf32>
    %7 = arith.addf %4, %6 : vector<8x256xf32>
    %8 = math.tanh %7 : vector<8x256xf32>
    %9 = arith.truncf %8 : vector<8x256xf32> to vector<8x256xbf16>
    %c0_6 = arith.constant 0 : index
    %c0_7 = arith.constant 0 : index
    %10 = vector.load %arg4[%c0_6, %c0_7] : memref<256x128xbf16, #tpu.memory_space<vmem>>, vector<256x128xbf16>
    %cst_8 = arith.constant dense<0.000000e+00> : vector<8x128xf32>
    %11 = tpu.matmul %9, %10, %cst_8 {dimension_numbers = #tpu.dot_dimension_numbers<[1], [0], [0], [1], [0, 0, 1, 1], [], []>} : vector<8x256xbf16>, vector<256x128xbf16>, vector<8x128xf32> -> vector<8x128xf32>
    %c0_9 = arith.constant 0 : index
    %c0_10 = arith.constant 0 : index
    %12 = vector.load %arg5[%c0_9, %c0_10] : memref<1x128xf32, #tpu.memory_space<vmem>>, vector<1x128xf32>
    %13 = vector.broadcast %12 : vector<1x128xf32> to vector<8x128xf32>
    %14 = arith.addf %11, %13 : vector<8x128xf32>
    %15 = vector.shape_cast %14 : vector<8x128xf32> to vector<1x8x128xf32>
    %16 = arith.truncf %15 : vector<1x8x128xf32> to vector<1x8x128xbf16>
    %c0_11 = arith.constant 0 : index
    %c0_12 = arith.constant 0 : index
    %c0_13 = arith.constant 0 : index
    %17 = vector.load %arg8[%c0_11, %c0_12, %c0_13] : memref<1x8x128xbf16, #tpu.memory_space<vmem>>, vector<1x8x128xbf16>
    tpu.vector_store %arg8[%c0_11, %c0_12, %c0_13], %16 {strides = array<i32>} : memref<1x8x128xbf16, #tpu.memory_space<vmem>>, vector<1x8x128xbf16>,
    %18 = vector.extract_strided_slice %15 {offsets = [0, 0, 24], sizes = [1, 8, 1], strides = [1, 1, 1]} : vector<1x8x128xf32> to vector<1x8x1xf32>
    %cst_14 = arith.constant dense<0xFF800000> : vector<1x1xf32>
    %19 = vector.multi_reduction <maximumf>, %18, %cst_14 [1] : vector<1x8x1xf32> to vector<1x1xf32>
    %20 = vector.shape_cast %19 : vector<1x1xf32> to vector<1x1x1xf32>
    %21 = vector.broadcast %20 : vector<1x1x1xf32> to vector<1x8x1xf32>
    %22 = arith.subf %18, %21 : vector<1x8x1xf32>
    %23 = math.exp %22 : vector<1x8x1xf32>
    %cst_15 = arith.constant dense<0.000000e+00> : vector<1x1xf32>
    %24 = vector.multi_reduction <add>, %23, %cst_15 [1] : vector<1x8x1xf32> to vector<1x1xf32>
    %25 = vector.shape_cast %24 : vector<1x1xf32> to vector<1x1x1xf32>
    %26 = tpu.reciprocal %25 {approx = true} : vector<1x1x1xf32> -> vector<1x1x1xf32>
    %27 = vector.broadcast %26 : vector<1x1x1xf32> to vector<1x8x1xf32>
    %28 = arith.mulf %23, %27 : vector<1x8x1xf32>
    %29 = vector.shape_cast %9 : vector<8x256xbf16> to vector<1x8x256xbf16>
    %30 = arith.truncf %28 : vector<1x8x1xf32> to vector<1x8x1xbf16>
    %31 = vector.broadcast %30 : vector<1x8x1xbf16> to vector<1x8x256xbf16>
    %32 = arith.mulf %29, %31 : vector<1x8x256xbf16>
    %33 = arith.extf %32 : vector<1x8x256xbf16> to vector<1x8x256xf32>
    %cst_16 = arith.constant dense<0.000000e+00> : vector<1x256xf32>
    %34 = vector.multi_reduction <add>, %33, %cst_16 [1] : vector<1x8x256xf32> to vector<1x256xf32>
    %35 = arith.truncf %34 : vector<1x256xf32> to vector<1x256xbf16>
    %c0_17 = arith.constant 0 : index
    %c0_18 = arith.constant 0 : index
    %36 = vector.load %arg6[%c0_17, %c0_18] : memref<256x128xbf16, #tpu.memory_space<vmem>>, vector<256x128xbf16>
    %cst_19 = arith.constant dense<0.000000e+00> : vector<1x128xf32>
    %37 = tpu.matmul %35, %36, %cst_19 {dimension_numbers = #tpu.dot_dimension_numbers<[1], [0], [0], [1], [0, 0, 1, 1], [], []>} : vector<1x256xbf16>, vector<256x128xbf16>, vector<1x128xf32> -> vector<1x128xf32>
    %c0_20 = arith.constant 0 : index
    %c0_21 = arith.constant 0 : index
    %38 = vector.load %arg7[%c0_20, %c0_21] : memref<1x128xf32, #tpu.memory_space<vmem>>, vector<1x128xf32>
    %39 = arith.addf %37, %38 : vector<1x128xf32>
    %40 = vector.shape_cast %39 : vector<1x128xf32> to vector<1x1x128xf32>
    %c0_22 = arith.constant 0 : index
    %c0_23 = arith.constant 0 : index
    %c0_24 = arith.constant 0 : index
    %41 = vector.load %arg9[%c0_22, %c0_23, %c0_24] : memref<1x1x128xf32, #tpu.memory_space<vmem>>, vector<1x1x128xf32>
    tpu.vector_store %arg9[%c0_22, %c0_23, %c0_24], %40 {strides = array<i32>} : memref<1x1x128xf32, #tpu.memory_space<vmem>>, vector<1x1x128xf32>,
    return
  }
  func.func @transform_0(%arg0: i32) -> (i32, i32, i32) {
    %c0_i32 = arith.constant 0 : i32
    %c0_i32_0 = arith.constant 0 : i32
    %c0_i32_1 = arith.constant 0 : i32
    return %arg0, %c0_i32, %c0_i32_0 : i32, i32, i32
  }
  func.func @transform_1(%arg0: i32) -> (i32, i32) {
    %c0_i32 = arith.constant 0 : i32
    %c0_i32_0 = arith.constant 0 : i32
    %c0_i32_1 = arith.constant 0 : i32
    return %c0_i32, %c0_i32_0 : i32, i32
  }
  func.func @transform_2(%arg0: i32) -> (i32, i32) {
    %c0_i32 = arith.constant 0 : i32
    %c0_i32_0 = arith.constant 0 : i32
    %c0_i32_1 = arith.constant 0 : i32
    return %c0_i32, %c0_i32_0 : i32, i32
  }
  func.func @transform_3(%arg0: i32) -> (i32, i32) {
    %c0_i32 = arith.constant 0 : i32
    %c0_i32_0 = arith.constant 0 : i32
    %c0_i32_1 = arith.constant 0 : i32
    return %c0_i32, %c0_i32_0 : i32, i32
  }
  func.func @transform_4(%arg0: i32) -> (i32, i32) {
    %c0_i32 = arith.constant 0 : i32
    %c0_i32_0 = arith.constant 0 : i32
    %c0_i32_1 = arith.constant 0 : i32
    return %c0_i32, %c0_i32_0 : i32, i32
  }
  func.func @transform_5(%arg0: i32) -> (i32, i32) {
    %c0_i32 = arith.constant 0 : i32
    %c0_i32_0 = arith.constant 0 : i32
    %c0_i32_1 = arith.constant 0 : i32
    return %c0_i32, %c0_i32_0 : i32, i32
  }
  func.func @transform_6(%arg0: i32) -> (i32, i32) {
    %c0_i32 = arith.constant 0 : i32
    %c0_i32_0 = arith.constant 0 : i32
    %c0_i32_1 = arith.constant 0 : i32
    return %c0_i32, %c0_i32_0 : i32, i32
  }
  func.func @transform_7(%arg0: i32) -> (i32, i32, i32) {
    %c0_i32 = arith.constant 0 : i32
    %c0_i32_0 = arith.constant 0 : i32
    %c0_i32_1 = arith.constant 0 : i32
    return %arg0, %c0_i32, %c0_i32_0 : i32, i32, i32
  }
  func.func @transform_8(%arg0: i32) -> (i32, i32, i32) {
    %c0_i32 = arith.constant 0 : i32
    %c0_i32_0 = arith.constant 0 : i32
    %c0_i32_1 = arith.constant 0 : i32
    return %arg0, %c0_i32, %c0_i32_0 : i32, i32, i32
  }
}

</mosaic_0001>

<bundles_post_ra>
// kernel: tpu_custom_call.1
= control target key start
LH: loop header
LB: loop body
LE: loop exit
PB: predicated region body
PF: predicated region fallthrough
CT: control target
= control target key end

     0   :  { %s2067_s0 = inlined_call_operand.hbm [shape: f32[2,8,256], index: 0, kind: input, shape index: {}]   ;;  %s2068_s1 = inlined_call_operand.hbm [shape: bf16[256,256], index: 1, kind: input, shape index: {}]   ;;  %s2069_s2 = inlined_call_operand.vmem [shape: f32[1,256], index: 2, kind: input, shape index: {}]   ;;  %s2070_s3 = inlined_call_operand.hbm [shape: bf16[256,128], index: 3, kind: input, shape index: {}]   ;;  %s2071_s4 = inlined_call_operand.vmem [shape: f32[1,128], index: 4, kind: input, shape index: {}]   ;;  %s2072_s5 = inlined_call_operand.hbm [shape: bf16[256,128], index: 5, kind: input, shape index: {}]   ;;  %s2073_s6 = inlined_call_operand.vmem [shape: f32[1,128], index: 6, kind: input, shape index: {}]   ;;  %s2074_s7 = inlined_call_operand.hbm [shape: bf16[2,8,128], index: 7, kind: output, shape index: {0}]   ;;  %s2075_s8 = inlined_call_operand.hbm [shape: f32[2,1,128], index: 8, kind: output, shape index: {1}]  }
   0x1   :  { %2081 = sst [smem:[#allocation20_spill]] %s2068_s1 }
   0x2   :  { %14 = vsyncpa [#allocation3], 0 }
   0x3   :  { %16 = vsyncpa [#allocation3 + $0x1], 0 }
   0x4   :  { %17 = vsyncpa [#allocation6], 0 }
   0x5   :  { %18 = vsyncpa [#allocation9], 0 }
   0x6   :  { %19 = vsyncpa [#allocation4], 0 }
   0x7   :  { %21 = vsyncpa [#allocation4 + $0x1], 0 }
   0x8   :  { %22 = vsyncpa [#allocation12], 0 }
   0x9   :  { %24 = vsyncpa [#allocation12 + $0x1], 0  ;;  %s1763_s27 = smov 0   ;;  %s1765_s28 = smov 0  }
   0xa   :  { %s1767_s29 = smov 0   ;;  %s1769_s30 = smov 0  }
   0xb LB: > { %2082 = sst [smem:[#allocation18_spill]] %s1693_s27  ;;  %s1784_s9 = sadd.s32 4294967295, %s1705_s30   ;;  %s1705_s30 = sphi %s1769_s30, %s2106_s30   ;;  %s1701_s29 = sphi %s1767_s29, %s2105_s29   ;;  %s1697_s28 = sphi %s1765_s28, %s2104_s28   ;;  %s1693_s27 = sphi %s1763_s27, %s2103_s27  }
   0xc   : > { %s1179_s10 = sadd.s32 4294967294, %s1705_s30   ;;  %p50_p0 = scmp.ne.s32.totalorder %s1697_s28, %s1693_s27 }
   0xd   : > { %p2076_p1 = scmp.eq.s32.totalorder %s1784_s9, 0  ;;  %p206_p3 = scmp.eq.s32.totalorder %s1179_s10, 1 }
   0xe   : > { %p1180_p5 = scmp.ge.s32.totalorder %s1705_s30, 1  ;;  %p239_p7 = scmp.lt.s32.totalorder %s1705_s30, 3 }
   0xf   : > { %p1793_p4 = por %p2076_p1, %p50_p0  ;;  %p1798_p6 = por %p206_p3, %p50_p0 }
  0x10   : > { %p1803_p8 = pnand %p1180_p5, %p239_p7  ;;  %s1707_s14 = smov [#allocation5]  }
  0x11   : > { %s2083_s11 = scalar_select %p1793_p4, 1, 0 }
  0x12   : > { %s2084_s12 = scalar_select %p1798_p6, 1, 0 }
  0x13   : > { %s2086_s13 = scalar_select %p1803_p8, 1, 0 }
  0x14   : > { %2085 = sst [smem:[#allocation19_spill]] %s2084_s12  ;;  %s251_s15 = sshll.u32 %s1707_s14, 4  ;;  %s1807_s15 = int_to_ptr.vmem [resolvable:$true] %s251_s15 }
  0x15   : > { %p1327_p9 = pneg %p1803_p8  ;;  %s1708_s17 = smov [#allocation7]  }
  0x16   : > { %s267_s18 = sshll.u32 %s1708_s17, 4  ;;  %s2088_s1 = sld [smem:[#allocation20_spill]]  ;;  %s1818_s18 = int_to_ptr.vmem [resolvable:$true] %s267_s18 }
  0x17   : > { %p1814_p11 = pnand %p1327_p9, %p2076_p1 }
  0x19   : > { %p1828_p13 = pneg %p1814_p11 }
  0x1c   : > { %s1485_s21 = scalar_lea.hbm %s2088_s1, 4096 }
  0x1d   : > { %p1486_p12 = scmp.ne.s32.totalorder %s2088_s1, %s1485_s21  ;;  %p1492_p5 = scmp.lt.u32.totalorder %s1485_s21, %s2088_s1 }
  0x1f   : > { %p1488_p0 = pnand %p1828_p13, %p1486_p12 }
  0x21   : > { %p1489_p3 = pneg %p1488_p0 }
  0x23   : > { %p1494_p7 = pnand %p1492_p5, %p1489_p3 }
  0x25   : > { %1497 = shalt.err (!%p1494_p7)
}
  0x26   : > { %s1498_s10 = scalar_lea.vmem %s1807_s15, 4096  ;;  %p1506_p2 = scmp.lt.s32.totalorder %s1807_s15, %s1807_s15 }
  0x27   : > { %p1499_p9 = scmp.ne.s32.totalorder %s1807_s15, %s1498_s10  ;;  %p1507_p6 = scmp.lt.s32.totalorder %s1498_s10, %s1498_s10 }
  0x29   : > { %p1501_p10 = pnand %p1499_p9, %p1828_p13  ;;  %p1508_p12 = por %p1507_p6, %p1506_p2 }
  0x2b   : > { %p1502_p1 = pneg %p1501_p10 }
  0x2d   : > { %p1509_p0 = pnand %p1508_p12, %p1502_p1 }
  0x2f   : > { %1512 = shalt.err (!%p1509_p0)
}
  0x30   : > { %s1709_s14 = smov 128   ;;  %s1710_s17 = smov 8  }
  0x31   : > { %1330 = dma.hbm_to_vmem [thread:$0]  (!%p1814_p11), %s2088_s1, 4096, %s1807_s15, [#allocation6], %s1709_s14, %s1709_s14, %s1710_s17  }
  0x32   : > { %s1513_s23 = scalar_lea.hbm %s2070_s3, 2048 }
  0x33   : > { %p1514_p2 = scmp.ne.s32.totalorder %s2070_s3, %s1513_s23  ;;  %p1520_p10 = scmp.lt.u32.totalorder %s1513_s23, %s2070_s3 }
  0x35   : > { %p1516_p1 = pnand %p1514_p2, %p1828_p13 }
  0x37   : > { %p1517_p6 = pneg %p1516_p1 }
  0x39   : > { %p1522_p3 = pnand %p1520_p10, %p1517_p6 }
  0x3b   : > { %1525 = shalt.err (!%p1522_p3)
}
  0x3c   : > { %s1526_s15 = scalar_lea.vmem %s1818_s18, 2048  ;;  %p1534_p12 = scmp.lt.s32.totalorder %s1818_s18, %s1818_s18 }
  0x3d   : > { %p1527_p5 = scmp.ne.s32.totalorder %s1818_s18, %s1526_s15  ;;  %p1535_p0 = scmp.lt.s32.totalorder %s1526_s15, %s1526_s15 }
  0x3f   : > { %p1529_p7 = pnand %p1527_p5, %p1828_p13  ;;  %p1536_p2 = por %p1535_p0, %p1534_p12 }
  0x41   : > { %p1530_p9 = pneg %p1529_p7 }
  0x43   : > { %p1537_p1 = pnand %p1536_p2, %p1530_p9 }
  0x45   : > { %1540 = shalt.err (!%p1537_p1)
}
  0x46   : > { %s1711_s14 = smov 64   ;;  %s1712_s12 = smov 4  }
  0x47   : > { %1333 = dma.hbm_to_vmem [thread:$0]  (!%p1814_p11), %s2070_s3, 2048, %s1818_s18, [#allocation6], %s1711_s14, %s1711_s14, %s1712_s12  }
  0x48   : > { %s1713_s20 = smov [#allocation8]   ;;  %s1873_s22 = sadd.s32 1, %s1705_s30  }
  0x49   : > { %s283_s21 = sshll.u32 %s1713_s20, 4  ;;  %s1541_s26 = scalar_lea.hbm %s2072_s5, 2048  ;;  %s284_s21 = int_to_ptr.vmem [resolvable:$true] %s283_s21 }
  0x4a   : > { %p1542_p6 = scmp.ne.s32.totalorder %s2072_s5, %s1541_s26  ;;  %p1548_p5 = scmp.lt.u32.totalorder %s1541_s26, %s2072_s5 }
  0x4c   : > { %p1544_p10 = pnand %p1542_p6, %p1828_p13 }
  0x4e   : > { %p1545_p3 = pneg %p1544_p10 }
  0x50   : > { %p1550_p7 = pnand %p1548_p5, %p1545_p3 }
  0x52   : > { %1553 = shalt.err (!%p1550_p7)
}
  0x53   : > { %s1554_s18 = scalar_lea.vmem %s284_s21, 2048  ;;  %p1562_p2 = scmp.lt.s32.totalorder %s284_s21, %s284_s21 }
  0x54   : > { %p1555_p9 = scmp.ne.s32.totalorder %s284_s21, %s1554_s18  ;;  %p1563_p1 = scmp.lt.s32.totalorder %s1554_s18, %s1554_s18 }
  0x56   : > { %p1557_p12 = pnand %p1555_p9, %p1828_p13  ;;  %p1564_p4 = por %p1563_p1, %p1562_p2 }
  0x58   : > { %p1558_p0 = pneg %p1557_p12 }
  0x5a   : > { %p1565_p8 = pnand %p1564_p4, %p1558_p0 }
  0x5c   : > { %1568 = shalt.err (!%p1565_p8)
}
  0x5d   : > { %1336 = dma.hbm_to_vmem [thread:$0]  (!%p1814_p11), %s2072_s5, 2048, %s284_s21, [#allocation9], %s1711_s14, %s1711_s14, %s1712_s12  }
  0x5e   : > { %s34_s1 = ssub.s32 %s1705_s30, %s1873_s22  ;;  %s37_s27 = sadd.s32 1, %s1701_s29 }
  0x5f   : > { %p35_p4 = scmp.eq.s32.totalorder %s34_s1, 0  ;;  %p44_p8 = scmp.ne.s32.totalorder %s1701_s29, %s1697_s28 }
  0x60   : > { %p45_p13 = scmp.eq.s32.totalorder %s1705_s30, 0  ;;  %p1351_p6 = scmp.lt.s32.totalorder %s1705_s30, 2 }
  0x61   : > { %s1901_s16 = scalar_select %p35_p4, %s1701_s29, %s37_s27  }
  0x62   : > { %p46_p10 = por %p45_p13, %p44_p8  ;;  %p2090_p3 = scmp.eq.s32.totalorder %s1784_s9, 1 }
  0x63   : > { %s300_s20 = sand.u32 1, %s1701_s29   ;;  %s1264_s23 = sshll.u32 %s1705_s30, 8 }
  0x64   : > { %p1905_p5 = por %p2090_p3, %p44_p8  ;;  %s1185_s25 = sshll.u32 %s300_s20, 4 }
  0x65   : > { %s1914_s14 = scalar_lea.hbm %s2067_s0, %s1264_s23  ;;  %s304_s12 = scalar_lea.vmem [#allocation2], %s1185_s25 }
  0x66   : > { %s312_s21 = sshll.u32 %s304_s12, 4  ;;  %p1916_p11 = pnand %p1351_p6, %p46_p10  ;;  %s1920_s21 = int_to_ptr.vmem [resolvable:$true] %s312_s21 }
  0x67   : > { %s301_s18 = scalar_lea.sflag [#allocation3], %s300_s20  ;;  %s1569_s17 = scalar_lea.hbm %s1914_s14, 256 }
  0x68   : > { %p1570_p7 = scmp.ne.s32.totalorder %s1914_s14, %s1569_s17  ;;  %p1571_p9 = pneg %p1916_p11 }
  0x69   : > { %s1574_s27 = scalar_lea.hbm %s2067_s0, 512  ;;  %p1575_p2 = scmp.lt.u32.totalorder %s1914_s14, %s2067_s0 }
  0x6a   : > { %p1572_p12 = pnand %p1571_p9, %p1570_p7  ;;  %p1576_p1 = scmp.lt.u32.totalorder %s1574_s27, %s1569_s17 }
  0x6b   : > { %p1578_p8 = scmp.lt.u32.totalorder %s1569_s17, %s1914_s14 }
  0x6c   : > { %p1573_p0 = pneg %p1572_p12  ;;  %p1577_p4 = por %p1576_p1, %p1575_p2 }
  0x6e   : > { %p1579_p13 = por %p1578_p8, %p1577_p4 }
  0x70   : > { %p1580_p6 = pnand %p1579_p13, %p1573_p0 }
  0x72   : > { %1583 = shalt.err (!%p1580_p6)
}
  0x73   : > { %s1584_s20 = scalar_lea.vmem %s1920_s21, 256  ;;  %s1714_s26 = smov [#allocation2]  }
  0x74   : > { %p1585_p10 = scmp.ne.s32.totalorder %s1920_s21, %s1584_s20  ;;  %s1589_s10 = sshll.u32 %s1714_s26, 4  ;;  %s1590_s10 = int_to_ptr.vmem [resolvable:$false] %s1589_s10 }
  0x75   : > { %s1591_s12 = scalar_lea.vmem %s1590_s10, 512  ;;  %p1592_p12 = scmp.lt.s32.totalorder %s1920_s21, %s1590_s10 }
  0x76   : > { %p1587_p3 = pnand %p1585_p10, %p1571_p9  ;;  %p1593_p2 = scmp.lt.s32.totalorder %s1591_s12, %s1584_s20 }
  0x78   : > { %p1588_p7 = pneg %p1587_p3  ;;  %p1594_p1 = por %p1593_p2, %p1592_p12 }
  0x7a   : > { %p1595_p4 = pnand %p1594_p1, %p1588_p7 }
  0x7c   : > { %1598 = shalt.err (!%p1595_p4)
}
  0x7d   : > { %1340 = dma.hbm_to_vmem [thread:$0]  (!%p1916_p11), %s1914_s14, 256, %s1920_s21, %s301_s18  }
  0x7e   : > { %p2093_p0 = scmp.ne.s32.totalorder %s2086_s13, 0 }
  0x7f   : > { %s1950_s17 = sand.u32 (!%p2093_p0), 1, %s1697_s28   ;;  %p2094_p9 = scmp.ne.s32.totalorder (!%p2093_p0), %s2083_s11, 0 }
  0x80   : > { %321 = sbr.rel (%p2093_p0) target bundleno = 1088 (0x440), region = 48  ;;  %s1189_s19 = sshll.u32 (!%p2093_p0), %s1950_s17, 4 }
  0x81   : > { %s324_s1 = scalar_lea.sflag (!%p2093_p0), [#allocation3], %s1950_s17  ;;  %s1954_s27 = scalar_lea.vmem (!%p2093_p0), [#allocation2], %s1189_s19 }
  0x87   : > { %1672 = dma.done.wait (%p2094_p9), %s324_s1, 256  }
  0x88   : > { %1674 = vsyncadd (%p2094_p9), %s324_s1, 4294967040  ;;  %p2095_p11 = scmp.eq.s32.totalorder %s1784_s9, 0 }
  0x8a   : > { %1676 = dma.done.wait (%p2095_p11), [#allocation6], 6144   ;;  %p2096_p8 = pmov %p2095_p11 }
  0x8c   : > { %1678 = vsyncadd (%p2096_p8), [#allocation6], 4294961152  ;;  %p2097_p13 = pmov %p2096_p8 }
  0x8d   : > { %p2098_p6 = pmov %p2096_p8 }
  0x8e   : > { %1680 = dma.done.wait (%p2097_p13), [#allocation9], 2048  }
  0x8f   : > { %1682 = vsyncadd (%p2098_p6), [#allocation9], 4294965248  ;;  %v1397_v0 = vld [vmem:[#allocation5 + $0x4] ss:$8 sps:$4 sm:$0xff]   ;;  %v1399_v1 = vld [vmem:[#allocation5] ss:$8 sps:$4 sm:$0xff]   ;;  %v415_v52 = vlaneseq }
  0x90   : > { %585 = vmatprep.subr.bf16.mxu0 %v1397_v0  ;;  %v1400_v2 = vld [vmem:[#allocation5 + $0x14] ss:$8 sps:$4 sm:$0xff]   ;;  %v1402_v3 = vld [vmem:[#allocation5 + $0x10] ss:$8 sps:$4 sm:$0xff]   ;;  %v1403_v4 = vld [vmem:[#allocation5 + $0x24] ss:$8 sps:$4 sm:$0xff]  }
  0x91   : > { %586 = vmatpush1.bf16.msra.mxu0 %v1399_v1  ;;  %v1405_v5 = vld [vmem:[#allocation5 + $0x20] ss:$8 sps:$4 sm:$0xff]   ;;  %v1406_v6 = vld [vmem:[#allocation5 + $0x34] ss:$8 sps:$4 sm:$0xff]   ;;  %v1408_v7 = vld [vmem:[#allocation5 + $0x30] ss:$8 sps:$4 sm:$0xff]  }
  0x92   : > { %587 = vmatprep.subr.bf16.mxu0 %v1400_v2  ;;  %v1409_v8 = vld [vmem:[#allocation5 + $0x44] ss:$8 sps:$4 sm:$0xff]   ;;  %v1411_v9 = vld [vmem:[#allocation5 + $0x40] ss:$8 sps:$4 sm:$0xff]   ;;  %v1412_v10 = vld [vmem:[#allocation5 + $0x54] ss:$8 sps:$4 sm:$0xff]  }
  0x93   : > { %v1414_v11 = vld [vmem:[#allocation5 + $0x50] ss:$8 sps:$4 sm:$0xff]   ;;  %v1415_v12 = vld [vmem:[#allocation5 + $0x64] ss:$8 sps:$4 sm:$0xff]   ;;  %v1417_v13 = vld [vmem:[#allocation5 + $0x60] ss:$8 sps:$4 sm:$0xff]  }
  0x94   : > { %v378_v14 = vld [vmem:[%s1954_s27 + $0x8] sm:$0xff]  ;;  %v1445_v17 = vld [vmem:[#allocation7 + $0x40] sm:$0xff]   ;;  %v1449_v22 = vld [vmem:[#allocation7 + $0x50] sm:$0xff]   ;;  %v416_v53 = vshrl.u32 %v415_v52, 7  ;;  %s1193_s15 = sshll.u32 %s1950_s17, 2  ;;  %vm807_vm0 = vcmask 203968  }
  0x95   : > { %588 = vmatpush1.bf16.msra.mxu0 %v1402_v3  ;;  %v1418_v15 = vld [vmem:[#allocation5 + $0x74] ss:$8 sps:$4 sm:$0xff]   ;;  %v380_v16 = vpack.c.bf16 %v378_v14, %v378_v14  ;;  %v1446_v18 = vld [vmem:[#allocation7] sm:$0xff]   ;;  %v1447_v19 = vld [vmem:[#allocation7 + $0x48] sm:$0xff]   ;;  %1265 = vmatprep.subr.bf16.mxu1 %v1445_v17  ;;  %s1984_s18 = scalar_lea.vmem [#allocation10], %s1193_s15  ;;  %s1260_s23 = sshll.u32 %s1784_s9, 6 }
  0x96   : > { %589 = vmatprep.subr.bf16.mxu0 %v1403_v4  ;;  %v1420_v20 = vld [vmem:[#allocation5 + $0x70] ss:$8 sps:$4 sm:$0xff]   ;;  %1266 = vmatpush3.bf16.msra.mxu1 %v1446_v18  ;;  %v1448_v21 = vld [vmem:[#allocation7 + $0x8] sm:$0xff]   ;;  %v1424_v26 = vld [vmem:[#allocation5 + $0x94] ss:$8 sps:$4 sm:$0xff]   ;;  %v417_v54 = vsub.s32 0, %v416_v53  ;;  %s1994_s26 = scalar_lea.hbm %s2074_s7, %s1260_s23 }
  0x97   : > { %617 = vmatprep.mubr.bf16.mxu0 %v380_v16  ;;  %1267 = vmatprep.subr.bf16.mxu1 %v1447_v19  ;;  %v1421_v23 = vld [vmem:[#allocation5 + $0x84] ss:$8 sps:$4 sm:$0xff]   ;;  %v1423_v24 = vld [vmem:[#allocation5 + $0x80] ss:$8 sps:$4 sm:$0xff]   ;;  %v1450_v25 = vld [vmem:[#allocation7 + $0x10] sm:$0xff]   ;;  %v421_v56 = vsub.s32 1, %v416_v53 }
  0x98   : > { %v1451_v27 = vld [vmem:[#allocation7 + $0x58] sm:$0xff]   ;;  %v1427_v30 = vld [vmem:[#allocation5 + $0xa4] ss:$8 sps:$4 sm:$0xff]   ;;  %v1429_v31 = vld [vmem:[#allocation5 + $0xa0] ss:$8 sps:$4 sm:$0xff]   ;;  %s1039_s10 = sshll.u32 %s1984_s18, 4  ;;  %s1040_s10 = int_to_ptr.vmem [resolvable:$true] %s1039_s10 }
  0x99   : > { %590 = vmatpush1.bf16.msra.mxu0 %v1405_v5  ;;  %v1452_v28 = vld [vmem:[#allocation7 + $0x18] sm:$0xff]   ;;  %v1433_v34 = vld [vmem:[#allocation5 + $0xc4] ss:$8 sps:$4 sm:$0xff]   ;;  %v1435_v35 = vld [vmem:[#allocation5 + $0xc0] ss:$8 sps:$4 sm:$0xff]   ;;  %v1715_v5 = vmov 24  }
  0x9a   : > { %591 = vmatprep.subr.bf16.mxu0 %v1406_v6  ;;  %1268 = vmatpush3.bf16.msra.mxu1 %v1448_v21  ;;  %v1426_v29 = vld [vmem:[#allocation5 + $0x90] ss:$8 sps:$4 sm:$0xff]   ;;  %v1430_v32 = vld [vmem:[#allocation5 + $0xb4] ss:$8 sps:$4 sm:$0xff]   ;;  %v1439_v38 = vld [vmem:[#allocation5 + $0xe4] ss:$8 sps:$4 sm:$0xff]  }
  0x9b   : > { %1269 = vmatprep.subr.bf16.mxu1 %v1449_v22  ;;  %v1432_v33 = vld [vmem:[#allocation5 + $0xb0] ss:$8 sps:$4 sm:$0xff]   ;;  %v1436_v36 = vld [vmem:[#allocation5 + $0xd4] ss:$8 sps:$4 sm:$0xff]   ;;  %v1441_v39 = vld [vmem:[#allocation5 + $0xe0] ss:$8 sps:$4 sm:$0xff]   ;;  %1396 = vset.pattern.permute.xlu0 %v1715_v5 }
  0x9c   : > { %v1438_v37 = vld [vmem:[#allocation5 + $0xd0] ss:$8 sps:$4 sm:$0xff]   ;;  %v1442_v40 = vld [vmem:[#allocation5 + $0xf4] ss:$8 sps:$4 sm:$0xff]   ;;  %v1453_v44 = vld [vmem:[#allocation7 + $0x60] sm:$0xff]   ;;  %s1022_s12 = scalar_lea.sflag [#allocation4], %s1950_s17 }
  0x9d   : > { %592 = vmatpush1.bf16.msra.mxu0 %v1408_v7  ;;  %v1444_v41 = vld [vmem:[#allocation5 + $0xf0] ss:$8 sps:$4 sm:$0xff]   ;;  %v1454_v45 = vld [vmem:[#allocation7 + $0x20] sm:$0xff]   ;;  %v1455_v46 = vld [vmem:[#allocation7 + $0x68] sm:$0xff]   ;;  %s1599_s19 = scalar_lea.vmem %s1040_s10, 64  ;;  %s1716_s1 = smov [#allocation10]  }
  0x9e   : > { %593 = vmatprep.subr.bf16.mxu0 %v1409_v8  ;;  %1270 = vmatpush3.bf16.msra.mxu1 %v1450_v25  ;;  %v377_v42 = vld [vmem:[%s1954_s27] sm:$0xff]  ;;  %v1456_v47 = vld [vmem:[#allocation7 + $0x28] sm:$0xff]   ;;  %v1459_v50 = vld [vmem:[#allocation7 + $0x78] sm:$0xff]   ;;  %p1600_p10 = scmp.ne.s32.totalorder %s1040_s10, %s1599_s19  ;;  %s1603_s27 = sshll.u32 %s1716_s1, 4  ;;  %s1604_s27 = int_to_ptr.vmem [resolvable:$false] %s1603_s27 }
  0x9f   : > { %1271 = vmatprep.subr.bf16.mxu1 %v1451_v27  ;;  %v379_v43 = vpack.c.bf16 %v377_v42, %v377_v42  ;;  %v1457_v48 = vld [vmem:[#allocation7 + $0x70] sm:$0xff]   ;;  %v1460_v51 = vld [vmem:[#allocation7 + $0x38] sm:$0xff]   ;;  %v413_v55 = vld [vmem:[%s2069_s2] sm:$0x3]  ;;  %s1605_s11 = scalar_lea.vmem %s1604_s27, 128  ;;  %p1606_p12 = scmp.lt.s32.totalorder %s1040_s10, %s1604_s27 }
  0xa0   : > { %v1458_v49 = vld [vmem:[#allocation7 + $0x30] sm:$0xff]   ;;  %v418_v57 = vrot.slane %v413_v55, %v417_v54  ;;  %v422_v58 = vrot.slane %v413_v55, %v421_v56  ;;  %v1461_v6 = vld [vmem:[#allocation8 + $0x40] sm:$0xff]   ;;  %v1463_v8 = vld [vmem:[#allocation8 + $0x48] sm:$0xff]   ;;  %p1601_p3 = pnand %p1600_p10, %p1905_p5  ;;  %p1607_p2 = scmp.lt.s32.totalorder %s1605_s11, %s1599_s19 }
  0xa1   : > { %594 = vmatpush1.bf16.msra.mxu0 %v1411_v9  ;;  %v1462_v7 = vld [vmem:[#allocation8] sm:$0xff]   ;;  %v1464_v9 = vld [vmem:[#allocation8 + $0x8] sm:$0xff]  }
  0xa2   : > { %595 = vmatprep.subr.bf16.mxu0 %v1412_v10  ;;  %1272 = vmatpush3.bf16.msra.mxu1 %v1452_v28  ;;  %v1465_v10 = vld [vmem:[#allocation8 + $0x50] sm:$0xff]   ;;  %v1226_v14 = vld [vmem:[%s2071_s4] ss:$0 sm:$0xff]  ;;  %p1602_p7 = pneg %p1601_p3  ;;  %p1608_p1 = por %p1607_p2, %p1606_p12 }
  0xa3   : > { %1273 = vmatprep.subr.bf16.mxu1 %v1453_v44  ;;  %v1469_v42 = vld [vmem:[#allocation8 + $0x60] sm:$0xff]   ;;  %v1471_v44 = vld [vmem:[#allocation8 + $0x68] sm:$0xff]  }
  0xa4   : > { %p1609_p4 = pnand %p1608_p1, %p1602_p7 }
  0xa5   : > { %596 = vmatpush1.bf16.msra.mxu0 %v1414_v11  ;;  %v1466_v11 = vld [vmem:[#allocation8 + $0x10] sm:$0xff]  }
  0xa6   : > { %597 = vmatprep.subr.bf16.mxu0 %v1415_v12  ;;  %1274 = vmatpush3.bf16.msra.mxu1 %v1454_v45  ;;  %v1467_v12 = vld [vmem:[#allocation8 + $0x58] sm:$0xff]   ;;  %v1472_v45 = vld [vmem:[#allocation8 + $0x28] sm:$0xff]  }
  0xa7   : > { %1275 = vmatprep.subr.bf16.mxu1 %v1455_v46  ;;  %v1473_v46 = vld [vmem:[#allocation8 + $0x70] sm:$0xff]  }
  0xa9   : > { %598 = vmatpush1.bf16.msra.mxu0 %v1417_v13 }
  0xaa   : > { %599 = vmatprep.subr.bf16.mxu0 %v1418_v15  ;;  %1276 = vmatpush3.bf16.msra.mxu1 %v1456_v47  ;;  %v1474_v47 = vld [vmem:[#allocation8 + $0x30] sm:$0xff]  }
  0xab   : > { %1277 = vmatprep.subr.bf16.mxu1 %v1457_v48  ;;  %v1475_v48 = vld [vmem:[#allocation8 + $0x78] sm:$0xff]  }
  0xad   : > { %600 = vmatpush1.bf16.msra.mxu0 %v1420_v20 }
  0xae   : > { %601 = vmatprep.subr.bf16.mxu0 %v1421_v23  ;;  %1278 = vmatpush3.bf16.msra.mxu1 %v1458_v49  ;;  %v1476_v49 = vld [vmem:[#allocation8 + $0x38] sm:$0xff]  }
  0xaf   : > { %1279 = vmatprep.subr.bf16.mxu1 %v1459_v50 }
  0xb1   : > { %602 = vmatpush1.bf16.msra.mxu0 %v1423_v24 }
  0xb2   : > { %603 = vmatprep.subr.bf16.mxu0 %v1424_v26  ;;  %1280 = vmatpush3.bf16.msra.mxu1 %v1460_v51 }
  0xb3   : > { %1287 = vmatprep.subr.bf16.mxu1 %v1461_v6 }
  0xb5   : > { %604 = vmatpush1.bf16.msra.mxu0 %v1426_v29 }
  0xb6   : > { %605 = vmatprep.subr.bf16.mxu0 %v1427_v30 }
  0xb9   : > { %606 = vmatpush1.bf16.msra.mxu0 %v1429_v31 }
  0xba   : > { %607 = vmatprep.subr.bf16.mxu0 %v1430_v32 }
  0xbd   : > { %608 = vmatpush1.bf16.msra.mxu0 %v1432_v33 }
  0xbe   : > { %609 = vmatprep.subr.bf16.mxu0 %v1433_v34 }
  0xc1   : > { %610 = vmatpush1.bf16.msra.mxu0 %v1435_v35 }
  0xc2   : > { %611 = vmatprep.subr.bf16.mxu0 %v1436_v36 }
  0xc5   : > { %612 = vmatpush1.bf16.msra.mxu0 %v1438_v37 }
  0xc6   : > { %613 = vmatprep.subr.bf16.mxu0 %v1439_v38 }
  0xc9   : > { %614 = vmatpush1.bf16.msra.mxu0 %v1441_v39 }
  0xca   : > { %615 = vmatprep.subr.bf16.mxu0 %v1442_v40 }
  0xcd   : > { %616 = vmatpush1.bf16.msra.mxu0 %v1444_v41  ;;  %v1468_v41 = vld [vmem:[#allocation8 + $0x18] sm:$0xff]  }
  0xd0   : > { %618 = vmatmul.mubr.bf16.vlgmr.msra.gmra.mrb[0].mxu0 %v379_v43  ;;  %v1470_v43 = vld [vmem:[#allocation8 + $0x20] sm:$0xff]  }
 0x1a3   : > { %v619_v59 = vpop.f32.mrb[0].mxu0 }
 0x1a4   : > { %v620_v60 = vadd.f32 %v619_v59, %v418_v57  ;;  %v621_v61 = vpop.f32.mrb[1].mxu0 }
 0x1a5   : > { %v622_v62 = vadd.f32 %v621_v61, %v422_v58  ;;  %v623_v63 = vpop.f32.mrb[2].mxu0 }
 0x1a6   : > { %1477 = vtanh.f32 %v620_v60  ;;  %v624_v0 = vpop.f32.mrb[3].mxu0 }
 0x1a7   : > { %1479 = vtanh.f32 %v622_v62 }
 0x1b0   : > { %v1478_v1 = vpop.eup %1477 }
 0x1b1   : > { %v1480_v2 = vpop.eup %1479  ;;  %v1975_v4 = vpack.c.bf16 %v1478_v1, %v1478_v1 }
 0x1b2   : > { %v1973_v3 = vpack.c.bf16 %v1480_v2, %v1480_v2 }
 0x1b4   : > { %797 = vmatprep.mubr.bf16.mxu1 %v1973_v3 }
 0x1b5   : > { %798 = vmatmul.mubr.bf16.vlgmr.msra.gmra.mrb[0].mxu1 %v1975_v4 }
 0x1b6   : > { %1288 = vmatpush3.bf16.msra.mxu1 %v1462_v7 }
 0x1b7   : > { %1289 = vmatprep.subr.bf16.mxu1 %v1463_v8 }
 0x1ba   : > { %1290 = vmatpush3.bf16.msra.mxu1 %v1464_v9 }
 0x1bb   : > { %1291 = vmatprep.subr.bf16.mxu1 %v1465_v10 }
 0x1be   : > { %1292 = vmatpush3.bf16.msra.mxu1 %v1466_v11 }
 0x1bf   : > { %1293 = vmatprep.subr.bf16.mxu1 %v1467_v12 }
 0x1c2   : > { %1294 = vmatpush3.bf16.msra.mxu1 %v1468_v41 }
 0x1c3   : > { %1295 = vmatprep.subr.bf16.mxu1 %v1469_v42 }
 0x1c6   : > { %1296 = vmatpush3.bf16.msra.mxu1 %v1470_v43 }
 0x1c7   : > { %1297 = vmatprep.subr.bf16.mxu1 %v1471_v44 }
 0x1ca   : > { %1298 = vmatpush3.bf16.msra.mxu1 %v1472_v45 }
 0x1cb   : > { %1299 = vmatprep.subr.bf16.mxu1 %v1473_v46 }
 0x1ce   : > { %1300 = vmatpush3.bf16.msra.mxu1 %v1474_v47 }
 0x1cf   : > { %1301 = vmatprep.subr.bf16.mxu1 %v1475_v48 }
 0x1d2   : > { %1302 = vmatpush3.bf16.msra.mxu1 %v1476_v49 }
 0x288   : > { %v1281_v13 = vpop.f32.mrb[0].mxu1 }
 0x289   : > { %v1282_v15 = vpop.f32.mrb[1].mxu1 }
 0x28a   : > { %v1283_v16 = vadd.f32 %v1282_v15, %v1281_v13  ;;  %v1284_v17 = vpop.f32.mrb[2].mxu1 }
 0x28b   : > { %v1285_v18 = vpop.f32.mrb[3].mxu1 }
 0x28c   : > { %v800_v19 = vadd.f32 %v1283_v16, %v1226_v14 }
 0x28e   : > { %v805_v20 = vpack.c.bf16 %v800_v19, %v800_v19  ;;  %v808_v21 = vsel %vm807_vm0, %v800_v19, -inf }
 0x28f   : > { %v809_v22 = vrot.slane %v808_v21, 4 }
 0x290   : > { %806 = vst [vmem:[%s1984_s18] sm:$0xf] %v805_v20 }
 0x291   : > { %v810_v23 = vmax.f32 %v808_v21, %v809_v22 }
 0x293   : > { %v811_v24 = vrot.slane %v810_v23, 2 }
 0x295   : > { %v812_v25 = vmax.f32 %v810_v23, %v811_v24 }
 0x297   : > { %v813_v26 = vrot.slane %v812_v25, 1 }
 0x299   : > { %v814_v27 = vmax.f32 %v812_v25, %v813_v26 }
 0x29b   : > { %v815_v28 = vsub.f32 %v800_v19, %v814_v27 }
 0x29d   : > { %v816_v29 = vmul.f32 1.442695, %v815_v28 }
 0x29f   : > { %1481 = vpow2.f32 %v816_v29 }
 0x2a9   : > { %v1482_v30 = vpop.eup %1481 }
 0x2aa   : > { %v818_v31 = vsel %vm807_vm0, %v1482_v30, 0.0 }
 0x2ab   : > { %v819_v32 = vrot.slane %v818_v31, 4 }
 0x2ad   : > { %v820_v33 = vadd.f32 %v819_v32, %v818_v31 }
 0x2af   : > { %v821_v34 = vrot.slane %v820_v33, 2 }
 0x2b1   : > { %v822_v35 = vadd.f32 %v821_v34, %v820_v33 }
 0x2b3   : > { %v823_v36 = vrot.slane %v822_v35, 1 }
 0x2b5   : > { %v824_v37 = vadd.f32 %v823_v36, %v822_v35 }
 0x2b7   : > { %1483 = vrcp.f32 %v824_v37 }
 0x2c1   : > { %v1484_v38 = vpop.eup %1483 }
 0x2c2   : > { %v826_v39 = vmul.f32 %v1484_v38, %v1482_v30 }
 0x2c4   : > { %v827_v40 = vpack.c.bf16 %v826_v39, %v826_v39 }
 0x2c6   : > { %830 = vperm.xlu0 %1396, %v827_v40  }
 0x345   : > { %v831_v50 = vpop.permute.xlu0 %830 }
 0x346   : > { %v833_v51 = vmul.bf16 %v831_v50, %v1975_v4  ;;  %v834_v52 = vmul.bf16 %v831_v50, %v1973_v3 }
 0x348   : > { %v835_v53 = vunpack.c.l.bf16 %v833_v51  ;;  %v836_v54 = vunpack.c.l.bf16 %v834_v52 }
 0x34a   : > { %v837_v55 = vrot.slane %v835_v53, 4  ;;  %v843_v56 = vrot.slane %v836_v54, 4 }
 0x34c   : > { %v838_v57 = vadd.f32 %v837_v55, %v835_v53  ;;  %v844_v58 = vadd.f32 %v843_v56, %v836_v54 }
 0x34e   : > { %v839_v59 = vrot.slane %v838_v57, 2  ;;  %v845_v60 = vrot.slane %v844_v58, 2 }
 0x350   : > { %v840_v61 = vadd.f32 %v839_v59, %v838_v57  ;;  %v846_v62 = vadd.f32 %v845_v60, %v844_v58 }
 0x352   : > { %v841_v63 = vrot.slane %v840_v61, 1  ;;  %v847_v0 = vrot.slane %v846_v62, 1 }
 0x354   : > { %v842_v1 = vadd.f32 %v841_v63, %v840_v61  ;;  %v848_v2 = vadd.f32 %v847_v0, %v846_v62 }
 0x356   : > { %v850_v4 = vpack.c.bf16 %v848_v2, %v848_v2  ;;  %v849_v3 = vpack.c.bf16 %v842_v1, %v842_v1 }
 0x358   : > { %1012 = vmatprep.mubr.bf16.mxu1 %v850_v4 }
 0x359   : > { %1013 = vmatmul.mubr.bf16.vlgmr.msra.gmra.mrb[4].mxu1 %v849_v3 }
 0x35a   : > { %1612 = shalt.err (!%p1609_p4)
}
 0x35b   : > { %s1613_s13 = scalar_lea.hbm %s1994_s26, 64  ;;  %s1617_s15 = scalar_lea.hbm %s2074_s7, 128 }
 0x35c   : > { %p1614_p0 = scmp.ne.s32.totalorder %s1994_s26, %s1613_s13  ;;  %p1618_p8 = scmp.lt.u32.totalorder %s1994_s26, %s2074_s7 }
 0x35d   : > { %p1619_p13 = scmp.lt.u32.totalorder %s1617_s15, %s1613_s13  ;;  %p1621_p10 = scmp.lt.u32.totalorder %s1613_s13, %s1994_s26 }
 0x35e   : > { %p1615_p9 = pnand %p1614_p0, %p1905_p5 }
 0x35f   : > { %p1620_p6 = por %p1619_p13, %p1618_p8 }
 0x360   : > { %p1616_p11 = pneg %p1615_p9 }
 0x361   : > { %p1622_p3 = por %p1621_p10, %p1620_p6 }
 0x363   : > { %p1623_p7 = pnand %p1622_p3, %p1616_p11 }
 0x365   : > { %1626 = shalt.err (!%p1623_p7)
}
 0x366   : > { %1323 = dma.vmem_to_hbm [thread:$0]  (%p1905_p5), %s1040_s10, 64, %s1994_s26, %s1022_s12   ;;  %v883_v6 = vld [vmem:[%s2073_s6] sm:$0x1] }
 0x367   : > { %s1261_s19 = sshll.u32 %s1784_s9, 4  ;;  %s375_s1 = scalar_lea.vmem [#allocation11], %s1950_s17 }
 0x368   : > { %s1052_s27 = sshll.u32 %s375_s1, 4  ;;  %s2023_s14 = scalar_lea.hbm %s2075_s8, %s1261_s19  ;;  %s2025_s27 = int_to_ptr.vmem [resolvable:$true] %s1052_s27 }
 0x369   : > { %s1027_s26 = scalar_lea.sflag [#allocation12], %s1950_s17  ;;  %s1627_s10 = scalar_lea.vmem %s2025_s27, 16 }
 0x36a   : > { %p1628_p12 = scmp.ne.s32.totalorder %s2025_s27, %s1627_s10  ;;  %s1717_s9 = smov [#allocation11]  }
 0x36b   : > { %s1631_s12 = sshll.u32 %s1717_s9, 4  ;;  %s1632_s12 = int_to_ptr.vmem [resolvable:$false] %s1631_s12 }
 0x36c   : > { %p1629_p2 = pnand %p1628_p12, %p1905_p5  ;;  %s1633_s21 = scalar_lea.vmem %s1632_s12, 32 }
 0x36d   : > { %p1634_p4 = scmp.lt.s32.totalorder %s2025_s27, %s1632_s12  ;;  %p1635_p0 = scmp.lt.s32.totalorder %s1633_s21, %s1627_s10 }
 0x36e   : > { %p1630_p1 = pneg %p1629_p2 }
 0x36f   : > { %p1636_p9 = por %p1635_p0, %p1634_p4 }
 0x371   : > { %p1637_p11 = pnand %p1636_p9, %p1630_p1 }
 0x42c   : > { %v1303_v5 = vpop.f32.mrb[4].mxu1 }
 0x42d   : > { %v1304_v7 = vpop.f32.mrb[5].mxu1 }
 0x42e   : > { %v1305_v8 = vadd.f32 %v1304_v7, %v1303_v5  ;;  %v1306_v9 = vpop.f32.mrb[6].mxu1 }
 0x42f   : > { %v1307_v10 = vpop.f32.mrb[7].mxu1 }
 0x430   : > { %v1015_v11 = vadd.f32 %v1305_v8, %v883_v6 }
 0x432   : > { %1020 = vst [vmem:[%s375_s1] sm:$0x1] %v1015_v11 }
 0x433   : > { %1640 = shalt.err (!%p1637_p11)
}
 0x434   : > { %s1641_s17 = scalar_lea.hbm %s2023_s14, 16  ;;  %s1645_s23 = scalar_lea.hbm %s2075_s8, 32 }
 0x435   : > { %p1642_p8 = scmp.ne.s32.totalorder %s2023_s14, %s1641_s17  ;;  %p1646_p10 = scmp.lt.u32.totalorder %s2023_s14, %s2075_s8 }
 0x436   : > { %p1647_p3 = scmp.lt.u32.totalorder %s1645_s23, %s1641_s17  ;;  %p1649_p12 = scmp.lt.u32.totalorder %s1641_s17, %s2023_s14 }
 0x437   : > { %p1643_p13 = pnand %p1642_p8, %p1905_p5 }
 0x438   : > { %p1648_p7 = por %p1647_p3, %p1646_p10 }
 0x439   : > { %p1644_p6 = pneg %p1643_p13 }
 0x43a   : > { %p1650_p2 = por %p1649_p12, %p1648_p7 }
 0x43c   : > { %p1651_p1 = pnand %p1650_p2, %p1644_p6 }
 0x43e   : > { %1654 = shalt.err (!%p1651_p1)
}
 0x43f   : > { %1324 = dma.vmem_to_hbm [thread:$0]  (%p1905_p5), %s2025_s27, 16, %s2023_s14, %s1027_s26  }
 0x440 PF: > { %s2099_s19 = sld [smem:[#allocation18_spill]]  ;;  %s2100_s1 = sld [smem:[#allocation19_spill]] }
 0x441   : > { %p2102_p0 = scmp.ge.s32.totalorder %s1705_s30, 2 }
 0x446   : > { %s1064_s11 = sand.u32 1, %s2099_s19   ;;  %p2101_p4 = scmp.ne.s32.totalorder %s2100_s1, 0 }
 0x447   : > { %s1065_s13 = scalar_lea.sflag [#allocation4], %s1064_s11 }
 0x448   : > { %p1342_p9 = pnand %p2102_p0, %p2101_p4 }
 0x44a   : > { %1684 = dma.done.wait (!%p1342_p9), %s1065_s13, 64  }
 0x44b   : > { %1686 = vsyncadd (!%p1342_p9), %s1065_s13, 4294967232  ;;  %s1074_s10 = scalar_lea.sflag [#allocation12], %s1064_s11 }
 0x44c   : > { %1688 = dma.done.wait (!%p1342_p9), %s1074_s10, 16  }
 0x44d   : > { %1690 = vsyncadd (!%p1342_p9), %s1074_s10, 4294967280  ;;  %p27_p5 = scmp.ge.s32.totalorder %s1873_s22, 4   ;;  %s2103_s27 = smov %s1697_s28 }
 0x44e   : > { %s2104_s28 = smov %s1701_s29  ;;  %s2105_s29 = smov %s1901_s16 }
 0x44f   : > { %s2106_s30 = smov %s1873_s22  ;;  %29 = sbr.rel (!%p27_p5) target bundleno = 11 (0xb), region = 122 }
 0x456   :  { %1078 = vsyncpa [#allocation3], 1 }
 0x457   :  { %1080 = vsyncpa [#allocation3 + $0x1], 1 }
 0x458   :  { %1081 = vsyncpa [#allocation6], 1 }
 0x459   :  { %1082 = vsyncpa [#allocation9], 1 }
 0x45a   :  { %1083 = vsyncpa [#allocation4], 1 }
 0x45b   :  { %1085 = vsyncpa [#allocation4 + $0x1], 1 }
 0x45c   :  { %1086 = vsyncpa [#allocation12], 1 }
 0x45d   :  { %1088 = vsyncpa [#allocation12 + $0x1], 1 }

</bundles_post_ra>
